<compile_context>
chip_gen: v7x
topology: tpu7x:2x2x1
jax: 0.10.0
libtpu: 0.0.40
codegen_flags: <defaults>
</compile_context>

<pallas_src>
import jax
import jax.numpy as jnp
from jax.experimental import pallas as pl
from jax.experimental.pallas import tpu as pltpu

BN_EPS = 1e-5

_TILE_BYTES_TARGET = 2 * 1024 * 1024   # >=2 MiB weight DMA per grid step
_TILE_ROWS_CAP = 1024                  # keeps double-buffered tiles + resident blocks well under VMEM


def _round_up(x, m):
    return ((x + m - 1) // m) * m


def _choose_tile_p(c_dim, p):
    """Class-tile width: multiple of 128, targeting a >=2 MiB bf16 weight DMA.

    Deterministic in (c_dim, p) and stable under p -> round_up(p, tile), so
    `prepare_classifier_weight` and `classifier_forward` always agree.
    """
    rows = (_TILE_BYTES_TARGET // (2 * c_dim)) // 128 * 128
    rows = max(128, min(_TILE_ROWS_CAP, rows))
    return min(rows, _round_up(p, 128))


def prepare_classifier_weight(weight):
    """One-time (per parameter update) weight prep -- keep OUT of the hot path.

    (P, C) fp32  ->  (C, P_pad) bf16 with P padded to a multiple of the class
    tile (padded columns are zero -> zero logits, sliced off in the wrapper).
    """
    p, c = weight.shape
    tile_p = _choose_tile_p(c, p)
    p_pad = _round_up(p, tile_p)
    w = weight
    if p_pad != p:
        w = jnp.pad(w, ((0, p_pad - p), (0, 0)))
    return jnp.transpose(w).astype(jnp.bfloat16)   # (C, P_pad)


def _classifier_kernel(x_ref, gamma_ref, beta_ref, w_ref, bn_ref, cls_ref):
    """Fused BatchNorm1d (batch stats) + Linear (no bias), tiled over P.

    x_ref:     (B, C)        input features
    gamma_ref: (1, C)  f32   BN weight
    beta_ref:  (1, C)  f32   BN bias
    w_ref:     (C, Tp) bf16  classifier weight tile (pre-transposed, pre-cast)
    bn_ref:    (B, C)  f32   output: normalized features
    cls_ref:   (B, Tp) f32   output: class-score tile
    """
    # BatchNorm1d, training mode: biased batch mean/var over the batch axis.
    # Recomputed every grid step (cheap, hidden under the weight DMA) so the
    # grid steps are independent and the P axis can run "parallel" on v7x.
    x = x_ref[...].astype(jnp.float32)
    inv_b = 1.0 / x.shape[0]
    mean = jnp.sum(x, axis=0, keepdims=True) * inv_b
    centered = x - mean
    var = jnp.sum(centered * centered, axis=0, keepdims=True) * inv_b
    inv_std = jax.lax.rsqrt(var + BN_EPS)
    bn = centered * (inv_std * gamma_ref[...]) + beta_ref[...]
    # Same values every step -> idempotent write; safe under "parallel".
    bn_ref[...] = bn.astype(bn_ref.dtype)

    # (B, C) x (C, Tp) -> (B, Tp): standard (M,K)x(K,N) MXU contraction,
    # bf16 operands, fp32 accumulation, lane-dense on the class axis.
    cls_ref[...] = jnp.dot(
        bn.astype(jnp.bfloat16),
        w_ref[...],
        preferred_element_type=jnp.float32,
    ).astype(cls_ref.dtype)


def classifier_forward(features, gamma, beta, w_prepped, pid_num):
    """features: (B, C, 1, 1) or (B, C); gamma/beta: (C,);
    w_prepped: (C, P_pad) bf16 from `prepare_classifier_weight`; pid_num: int P."""
    x = features.reshape(features.shape[0], -1)   # == .squeeze() for (B, C, 1, 1)
    B, C = x.shape
    Cw, p_pad = w_prepped.shape
    assert Cw == C, "prepared classifier weight must be (c_dim, P_pad)"

    tile_p = _choose_tile_p(C, p_pad)
    assert p_pad % tile_p == 0
    n_tiles = p_pad // tile_p

    gamma2 = gamma.reshape(1, C).astype(jnp.float32)
    beta2 = beta.reshape(1, C).astype(jnp.float32)

    cost = pl.CostEstimate(
        flops=2 * B * p_pad * C,
        transcendentals=n_tiles * C,                       # rsqrt per feature per step
        bytes_accessed=(p_pad * C * 2                      # bf16 weight stream (dominant)
                        + B * C * 4                        # x in
                        + B * C * 4                        # bn out
                        + B * p_pad * 4),                  # cls out
    )

    bn_out, cls_out = pl.pallas_call(
        _classifier_kernel,
        out_shape=(
            jax.ShapeDtypeStruct((B, C), jnp.float32),
            jax.ShapeDtypeStruct((B, p_pad), jnp.float32),
        ),
        grid_spec=pltpu.PrefetchScalarGridSpec(
            num_scalar_prefetch=0,
            grid=(n_tiles,),
            in_specs=[
                pl.BlockSpec((B, C), lambda p: (0, 0)),        # x (grid-invariant)
                pl.BlockSpec((1, C), lambda p: (0, 0)),        # gamma
                pl.BlockSpec((1, C), lambda p: (0, 0)),        # beta
                pl.BlockSpec((C, tile_p), lambda p: (0, p)),   # weight tile (streamed)
            ],
            out_specs=(
                pl.BlockSpec((B, C), lambda p: (0, 0)),        # bn
                pl.BlockSpec((B, tile_p), lambda p: (0, p)),   # cls tile (lane-dense)
            ),
        ),
        compiler_params=pltpu.CompilerParams(
            # Per-step BN recompute makes steps independent -> shard the class
            # axis across both v7x TensorCores (no-op on single-TC v5e/v6e).
            dimension_semantics=("parallel",),
            vmem_limit_bytes=32 * 1024 * 1024,
        ),
        cost_estimate=cost,
    )(x, gamma2, beta2, w_prepped)

    return bn_out, cls_out[:, :pid_num]


def _reference(features, gamma, beta, weight):
    x = features.reshape(features.shape[0], -1).astype(jnp.float32)
    mean = jnp.mean(x, axis=0, keepdims=True)
    var = jnp.mean((x - mean) ** 2, axis=0, keepdims=True)
    bn = (x - mean) / jnp.sqrt(var + BN_EPS) * gamma[None, :] + beta[None, :]
    return bn, bn @ weight.T.astype(jnp.float32)


if __name__ == "__main__":
    key = jax.random.PRNGKey(0)

    # (B, C, P): one single-tile config and one multi-tile config
    # (P=1300, C=256 -> tile_p=1024, P_pad=2048, 2 grid steps).
    for (B, C, P) in [(16, 128, 300), (8, 256, 1300)]:
        k_x, k_g, k_w, key = jax.random.split(key, 4)
        features = jax.random.normal(k_x, (B, C, 1, 1), dtype=jnp.float32)

        # weights_init_kaiming on BN: weight ~ N(1, 0.02), bias = 0
        gamma = 1.0 + 0.02 * jax.random.normal(k_g, (C,), dtype=jnp.float32)
        beta = jnp.zeros((C,), dtype=jnp.float32)
        # weights_init_classifier: weight ~ N(0, 0.001)
        weight = 0.001 * jax.random.normal(k_w, (P, C), dtype=jnp.float32)

        # One-time prep (per parameter update) -- outside the hot path.
        w_prepped = prepare_classifier_weight(weight)

        bn_out, cls_out = classifier_forward(features, gamma, beta, w_prepped, P)
        jax.block_until_ready((bn_out, cls_out))

        bn_ref, cls_ref = _reference(features, gamma, beta, weight)
        assert bn_out.shape == (B, C) and cls_out.shape == (B, P)
        # BN path is fully fp32.
        assert jnp.allclose(bn_out, bn_ref, atol=1e-4, rtol=1e-4)
        # Logits use bf16 MXU operands with fp32 accumulation -> looser tolerance.
        assert jnp.allclose(cls_out, cls_ref, atol=1e-3, rtol=3e-2)

    print("KERNEL_OK")
</pallas_src>

<mosaic_0001>
module attributes {stable_mosaic.version = 11 : i64} {
  func.func @_classifier_kernel(%arg0: i32, %arg1: memref<16x128xf32, #tpu.memory_space<vmem>>, %arg2: memref<1x128xf32, #tpu.memory_space<vmem>>, %arg3: memref<1x128xf32, #tpu.memory_space<vmem>>, %arg4: memref<128x384xbf16, #tpu.memory_space<vmem>>, %arg5: memref<16x128xf32, #tpu.memory_space<vmem>>, %arg6: memref<16x384xf32, #tpu.memory_space<vmem>>) attributes {dimension_semantics = [#tpu.dimension_semantics<parallel>], iteration_bounds = array<i64: 1>, scalar_prefetch = 0 : i64, scratch_operands = 0 : i64, tpu.core_type = #tpu.core_type<tc>, window_params = [{pipeline_mode = #tpu.pipeline_mode<synchronous>, transform_indices = @transform_0, window_bounds = array<i64: 16, 128>}, {pipeline_mode = #tpu.pipeline_mode<synchronous>, transform_indices = @transform_1, window_bounds = array<i64: 1, 128>}, {pipeline_mode = #tpu.pipeline_mode<synchronous>, transform_indices = @transform_2, window_bounds = array<i64: 1, 128>}, {transform_indices = @transform_3, window_bounds = array<i64: 128, 384>}, {pipeline_mode = #tpu.pipeline_mode<synchronous>, transform_indices = @transform_4, window_bounds = array<i64: 16, 128>}, {transform_indices = @transform_5, window_bounds = array<i64: 16, 384>}]} {
    %c0 = arith.constant 0 : index
    %c0_0 = arith.constant 0 : index
    %0 = vector.load %arg1[%c0, %c0_0] : memref<16x128xf32, #tpu.memory_space<vmem>>, vector<16x128xf32>
    %cst = arith.constant dense<0.000000e+00> : vector<128xf32>
    %1 = vector.multi_reduction <add>, %0, %cst [0] : vector<16x128xf32> to vector<128xf32>
    %2 = vector.shape_cast %1 : vector<128xf32> to vector<1x128xf32>
    %cst_1 = arith.constant 6.250000e-02 : f32
    %3 = vector.broadcast %cst_1 : f32 to vector<1x128xf32>
    %4 = arith.mulf %2, %3 : vector<1x128xf32>
    %5 = vector.broadcast %4 : vector<1x128xf32> to vector<16x128xf32>
    %6 = arith.subf %0, %5 : vector<16x128xf32>
    %7 = arith.mulf %6, %6 : vector<16x128xf32>
    %cst_2 = arith.constant dense<0.000000e+00> : vector<128xf32>
    %8 = vector.multi_reduction <add>, %7, %cst_2 [0] : vector<16x128xf32> to vector<128xf32>
    %9 = vector.shape_cast %8 : vector<128xf32> to vector<1x128xf32>
    %cst_3 = arith.constant 6.250000e-02 : f32
    %10 = vector.broadcast %cst_3 : f32 to vector<1x128xf32>
    %11 = arith.mulf %9, %10 : vector<1x128xf32>
    %cst_4 = arith.constant 9.99999974E-6 : f32
    %12 = vector.broadcast %cst_4 : f32 to vector<1x128xf32>
    %13 = arith.addf %11, %12 : vector<1x128xf32>
    %14 = math.rsqrt %13 : vector<1x128xf32>
    %c0_5 = arith.constant 0 : index
    %c0_6 = arith.constant 0 : index
    %15 = vector.load %arg2[%c0_5, %c0_6] : memref<1x128xf32, #tpu.memory_space<vmem>>, vector<1x128xf32>
    %16 = arith.mulf %14, %15 : vector<1x128xf32>
    %17 = vector.broadcast %16 : vector<1x128xf32> to vector<16x128xf32>
    %18 = arith.mulf %6, %17 : vector<16x128xf32>
    %c0_7 = arith.constant 0 : index
    %c0_8 = arith.constant 0 : index
    %19 = vector.load %arg3[%c0_7, %c0_8] : memref<1x128xf32, #tpu.memory_space<vmem>>, vector<1x128xf32>
    %20 = vector.broadcast %19 : vector<1x128xf32> to vector<16x128xf32>
    %21 = arith.addf %18, %20 : vector<16x128xf32>
    %c0_9 = arith.constant 0 : index
    %c0_10 = arith.constant 0 : index
    %22 = vector.load %arg5[%c0_9, %c0_10] : memref<16x128xf32, #tpu.memory_space<vmem>>, vector<16x128xf32>
    tpu.vector_store %arg5[%c0_9, %c0_10], %21 {strides = array<i32>} : memref<16x128xf32, #tpu.memory_space<vmem>>, vector<16x128xf32>,
    %23 = arith.truncf %21 : vector<16x128xf32> to vector<16x128xbf16>
    %c0_11 = arith.constant 0 : index
    %c0_12 = arith.constant 0 : index
    %24 = vector.load %arg4[%c0_11, %c0_12] : memref<128x384xbf16, #tpu.memory_space<vmem>>, vector<128x384xbf16>
    %cst_13 = arith.constant dense<0.000000e+00> : vector<16x384xf32>
    %25 = tpu.matmul %23, %24, %cst_13 {dimension_numbers = #tpu.dot_dimension_numbers<[1], [0], [0], [1], [0, 0, 1, 1], [], []>} : vector<16x128xbf16>, vector<128x384xbf16>, vector<16x384xf32> -> vector<16x384xf32>
    %c0_14 = arith.constant 0 : index
    %c0_15 = arith.constant 0 : index
    %26 = vector.load %arg6[%c0_14, %c0_15] : memref<16x384xf32, #tpu.memory_space<vmem>>, vector<16x384xf32>
    tpu.vector_store %arg6[%c0_14, %c0_15], %25 {strides = array<i32>} : memref<16x384xf32, #tpu.memory_space<vmem>>, vector<16x384xf32>,
    return
  }
  func.func @transform_0(%arg0: i32) -> (i32, i32) {
    %c0_i32 = arith.constant 0 : i32
    %c0_i32_0 = arith.constant 0 : i32
    %c0_i32_1 = arith.constant 0 : i32
    return %c0_i32, %c0_i32_0 : i32, i32
  }
  func.func @transform_1(%arg0: i32) -> (i32, i32) {
    %c0_i32 = arith.constant 0 : i32
    %c0_i32_0 = arith.constant 0 : i32
    %c0_i32_1 = arith.constant 0 : i32
    return %c0_i32, %c0_i32_0 : i32, i32
  }
  func.func @transform_2(%arg0: i32) -> (i32, i32) {
    %c0_i32 = arith.constant 0 : i32
    %c0_i32_0 = arith.constant 0 : i32
    %c0_i32_1 = arith.constant 0 : i32
    return %c0_i32, %c0_i32_0 : i32, i32
  }
  func.func @transform_3(%arg0: i32) -> (i32, i32) {
    %c0_i32 = arith.constant 0 : i32
    %c0_i32_0 = arith.constant 0 : i32
    return %c0_i32, %arg0 : i32, i32
  }
  func.func @transform_4(%arg0: i32) -> (i32, i32) {
    %c0_i32 = arith.constant 0 : i32
    %c0_i32_0 = arith.constant 0 : i32
    %c0_i32_1 = arith.constant 0 : i32
    return %c0_i32, %c0_i32_0 : i32, i32
  }
  func.func @transform_5(%arg0: i32) -> (i32, i32) {
    %c0_i32 = arith.constant 0 : i32
    %c0_i32_0 = arith.constant 0 : i32
    return %c0_i32, %arg0 : i32, i32
  }
}

</mosaic_0001>

<bundles_post_ra>
// kernel: tpu_custom_call.1
= control target key start
LH: loop header
LB: loop body
LE: loop exit
PB: predicated region body
PF: predicated region fallthrough
CT: control target
= control target key end

     0   :  { %11 = vsyncpa [#allocation3], 0  ;;  %s687_s0 = inlined_call_operand.hbm [shape: f32[16,128], index: 0, kind: input, shape index: {}]   ;;  %s688_s1 = inlined_call_operand.vmem [shape: f32[1,128], index: 1, kind: input, shape index: {}]   ;;  %s689_s2 = inlined_call_operand.vmem [shape: f32[1,128], index: 2, kind: input, shape index: {}]   ;;  %s690_s3 = inlined_call_operand.hbm [shape: bf16[128,384], index: 3, kind: input, shape index: {}]   ;;  %s691_s4 = inlined_call_operand.hbm [shape: f32[16,128], index: 4, kind: output, shape index: {0}]   ;;  %s692_s5 = inlined_call_operand.hbm [shape: f32[16,384], index: 5, kind: output, shape index: {1}]  }
   0x1   :  { %12 = vsyncpa [#allocation6], 0 }
   0x2   :  { %13 = vsyncpa [#allocation4], 0 }
   0x3   :  { %14 = vsyncpa [#allocation9], 0  ;;  %s575_s18 = smov [#allocation2]   ;;  %s479_s22 = scalar_lea.hbm %s687_s0, 256 }
   0x4   :  { %s20_s19 = sshll.u32 %s575_s18, 4  ;;  %p480_p0 = scmp.ne.s32.totalorder %s687_s0, %s479_s22  ;;  %s21_s19 = int_to_ptr.vmem [resolvable:$true] %s20_s19 }
   0x5   :  { %p483_p1 = scmp.lt.u32.totalorder %s479_s22, %s687_s0 }
   0x7   :  { %p485_p2 = pnand %p483_p1, %p480_p0 }
   0x9   :  { %488 = shalt.err (!%p485_p2)
}
   0xa   :  { %s489_s27 = scalar_lea.vmem %s21_s19, 256  ;;  %p494_p4 = scmp.lt.s32.totalorder %s21_s19, %s21_s19 }
   0xb   :  { %p490_p3 = scmp.ne.s32.totalorder %s21_s19, %s489_s27  ;;  %p495_p5 = scmp.lt.s32.totalorder %s489_s27, %s489_s27 }
   0xd   :  { %p496_p6 = por %p495_p5, %p494_p4 }
   0xf   :  { %p497_p7 = pnand %p496_p6, %p490_p3 }
  0x11   :  { %500 = shalt.err (!%p497_p7)
}
  0x12   :  { %s576_s28 = smov 128   ;;  %s577_s29 = smov 8  }
  0x13   :  { %26 = dma.hbm_to_vmem [thread:$0]  %s687_s0, 256, %s21_s19, [#allocation3], %s576_s28, %s576_s28, %s577_s29  }
  0x14   :  { %s578_s7 = smov [#allocation5]   ;;  %s501_s11 = scalar_lea.hbm %s690_s3, 3072 }
  0x15   :  { %s36_s8 = sshll.u32 %s578_s7, 4  ;;  %p502_p8 = scmp.ne.s32.totalorder %s690_s3, %s501_s11  ;;  %s37_s8 = int_to_ptr.vmem [resolvable:$true] %s36_s8 }
  0x16   :  { %p505_p9 = scmp.lt.u32.totalorder %s501_s11, %s690_s3 }
  0x18   :  { %p507_p10 = pnand %p505_p9, %p502_p8 }
  0x1a   :  { %510 = shalt.err (!%p507_p10)
}
  0x1b   :  { %s511_s16 = scalar_lea.vmem %s37_s8, 3072  ;;  %p516_p12 = scmp.lt.s32.totalorder %s37_s8, %s37_s8 }
  0x1c   :  { %p512_p11 = scmp.ne.s32.totalorder %s37_s8, %s511_s16  ;;  %p517_p13 = scmp.lt.s32.totalorder %s511_s16, %s511_s16 }
  0x1e   :  { %p518_p0 = por %p517_p13, %p516_p12 }
  0x20   :  { %p519_p1 = pnand %p518_p0, %p512_p11 }
  0x22   :  { %522 = shalt.err (!%p519_p1)
}
  0x23   :  { %s579_s0 = smov 192   ;;  %s580_s17 = smov 12  }
  0x24   :  { %42 = dma.hbm_to_vmem [thread:$0]  %s690_s3, 3072, %s37_s8, [#allocation6], %s579_s0, %s579_s0, %s580_s17  }
  0x25   :  { %567 = dma.done.wait [#allocation3], 256  }
  0x26   :  { %568 = vsyncadd [#allocation3], 4294967040 }
  0x27   :  { %569 = dma.done.wait [#allocation6], 3072  }
  0x28   :  { %570 = vsyncadd [#allocation6], 4294964224  ;;  %v581_v0 = vmov 0.0   ;;  %v582_v1 = vmov 0   ;;  %vm583_vm0 = vmmov 0   ;;  %v50_v18 = vld [vmem:[#allocation2] sm:$0xff]  ;;  %v76_v49 = vlaneseq }
  0x29   :  { %412 = vmatprep.subr.bf16.mxu1 %v581_v0  ;;  %286 = vmatprep.mubr.bf16.mxu0 %v582_v1  ;;  %v445_v2 = vld [vmem:[#allocation5 + $0x4] ss:$12 sps:$4 sm:$0xff]   ;;  %v447_v3 = vld [vmem:[#allocation5] ss:$12 sps:$4 sm:$0xff]   ;;  %v448_v4 = vld [vmem:[#allocation5 + $0x8] ss:$12 sps:$4 sm:$0xff]  }
  0x2a   :  { %428 = vmatprep.mubr.msk.bf16.mxu1 %vm583_vm0, %v581_v0  ;;  %254 = vmatprep.subr.bf16.mxu0 %v445_v2  ;;  %v449_v5 = vld [vmem:[#allocation5 + $0x1c] ss:$12 sps:$4 sm:$0xff]   ;;  %v451_v6 = vld [vmem:[#allocation5 + $0x18] ss:$12 sps:$4 sm:$0xff]   ;;  %v452_v7 = vld [vmem:[#allocation5 + $0x20] ss:$12 sps:$4 sm:$0xff]  }
  0x2b   :  { %255 = vmatpush1.bf16.msra.mxu0 %v447_v3  ;;  %413 = vmatpush3.bf16.msra.mxu1 %v448_v4  ;;  %v453_v8 = vld [vmem:[#allocation5 + $0x34] ss:$12 sps:$4 sm:$0xff]   ;;  %v455_v9 = vld [vmem:[#allocation5 + $0x30] ss:$12 sps:$4 sm:$0xff]   ;;  %v456_v10 = vld [vmem:[#allocation5 + $0x38] ss:$12 sps:$4 sm:$0xff]  }
  0x2c   :  { %256 = vmatprep.subr.bf16.mxu0 %v449_v5  ;;  %414 = vmatprep.subr.bf16.mxu1 %v581_v0  ;;  %v457_v11 = vld [vmem:[#allocation5 + $0x4c] ss:$12 sps:$4 sm:$0xff]   ;;  %v459_v12 = vld [vmem:[#allocation5 + $0x48] ss:$12 sps:$4 sm:$0xff]   ;;  %v460_v13 = vld [vmem:[#allocation5 + $0x50] ss:$12 sps:$4 sm:$0xff]  }
  0x2d   :  { %v461_v14 = vld [vmem:[#allocation5 + $0x64] ss:$12 sps:$4 sm:$0xff]   ;;  %v463_v15 = vld [vmem:[#allocation5 + $0x60] ss:$12 sps:$4 sm:$0xff]   ;;  %v464_v16 = vld [vmem:[#allocation5 + $0x68] ss:$12 sps:$4 sm:$0xff]  }
  0x2e   :  { %v465_v17 = vld [vmem:[#allocation5 + $0x7c] ss:$12 sps:$4 sm:$0xff]   ;;  %v467_v19 = vld [vmem:[#allocation5 + $0x78] ss:$12 sps:$4 sm:$0xff]   ;;  %v468_v21 = vld [vmem:[#allocation5 + $0x80] ss:$12 sps:$4 sm:$0xff]  }
  0x2f   :  { %257 = vmatpush1.bf16.msra.mxu0 %v451_v6  ;;  %415 = vmatpush3.bf16.msra.mxu1 %v452_v7  ;;  %v51_v20 = vld [vmem:[#allocation2 + $0x8] sm:$0xff]  ;;  %v469_v22 = vld [vmem:[#allocation5 + $0x94] ss:$12 sps:$4 sm:$0xff]   ;;  %v77_v50 = vshrl.u32 %v76_v49, 7  ;;  %v74_v51 = vld [vmem:[%s688_s1] sm:$0x1] }
  0x30   :  { %258 = vmatprep.subr.bf16.mxu0 %v453_v8  ;;  %416 = vmatprep.subr.bf16.mxu1 %v581_v0  ;;  %v52_v23 = vadd.f32 %v51_v20, %v50_v18  ;;  %v471_v25 = vld [vmem:[#allocation5 + $0x90] ss:$12 sps:$4 sm:$0xff]   ;;  %v472_v26 = vld [vmem:[#allocation5 + $0x98] ss:$12 sps:$4 sm:$0xff]   ;;  %v475_v30 = vld [vmem:[#allocation5 + $0xa8] ss:$12 sps:$4 sm:$0xff]  }
  0x31   :  { %v473_v27 = vld [vmem:[#allocation5 + $0xac] ss:$12 sps:$4 sm:$0xff]   ;;  %v476_v31 = vld [vmem:[#allocation5 + $0xb0] ss:$12 sps:$4 sm:$0xff]   ;;  %v78_v52 = vsub.s32 0, %v77_v50  ;;  %s584_s23 = smov [#allocation7]  }
  0x32   :  { %v53_v24 = vrot.slane %v52_v23, 4  ;;  %v378_v56 = vld [vmem:[%s689_s2] ss:$0 sm:$0xff]  ;;  %s349_s24 = sshll.u32 %s584_s23, 4  ;;  %s350_s24 = int_to_ptr.vmem [resolvable:$true] %s349_s24 }
  0x33   :  { %259 = vmatpush1.bf16.msra.mxu0 %v455_v9  ;;  %417 = vmatpush3.bf16.msra.mxu1 %v456_v10  ;;  %s523_s1 = scalar_lea.vmem %s350_s24, 256  ;;  %p528_p3 = scmp.lt.s32.totalorder %s350_s24, %s350_s24 }
  0x34   :  { %260 = vmatprep.subr.bf16.mxu0 %v457_v11  ;;  %418 = vmatprep.subr.bf16.mxu1 %v581_v0  ;;  %v54_v28 = vadd.f32 %v53_v24, %v52_v23  ;;  %p524_p2 = scmp.ne.s32.totalorder %s350_s24, %s523_s1  ;;  %p529_p4 = scmp.lt.s32.totalorder %s523_s1, %s523_s1 }
  0x36   :  { %v55_v29 = vrot.slane %v54_v28, 2  ;;  %p530_p5 = por %p529_p4, %p528_p3 }
  0x37   :  { %261 = vmatpush1.bf16.msra.mxu0 %v459_v12  ;;  %419 = vmatpush3.bf16.msra.mxu1 %v460_v13 }
  0x38   :  { %262 = vmatprep.subr.bf16.mxu0 %v461_v14  ;;  %420 = vmatprep.subr.bf16.mxu1 %v581_v0  ;;  %v56_v32 = vadd.f32 %v55_v29, %v54_v28  ;;  %p531_p6 = pnand %p530_p5, %p524_p2 }
  0x3a   :  { %v57_v33 = vrot.slane %v56_v32, 1 }
  0x3b   :  { %263 = vmatpush1.bf16.msra.mxu0 %v463_v15  ;;  %421 = vmatpush3.bf16.msra.mxu1 %v464_v16 }
  0x3c   :  { %264 = vmatprep.subr.bf16.mxu0 %v465_v17  ;;  %422 = vmatprep.subr.bf16.mxu1 %v581_v0  ;;  %v58_v34 = vadd.f32 %v57_v33, %v56_v32 }
  0x3e   :  { %v59_v35 = vmul.f32 0.0625, %v58_v34 }
  0x3f   :  { %265 = vmatpush1.bf16.msra.mxu0 %v467_v19  ;;  %423 = vmatpush3.bf16.msra.mxu1 %v468_v21 }
  0x40   :  { %266 = vmatprep.subr.bf16.mxu0 %v469_v22  ;;  %424 = vmatprep.subr.bf16.mxu1 %v581_v0  ;;  %v60_v36 = vsub.f32 %v50_v18, %v59_v35  ;;  %v61_v37 = vsub.f32 %v51_v20, %v59_v35 }
  0x42   :  { %v62_v38 = vmul.f32 %v60_v36, %v60_v36  ;;  %v63_v39 = vmul.f32 %v61_v37, %v61_v37 }
  0x43   :  { %267 = vmatpush1.bf16.msra.mxu0 %v471_v25  ;;  %425 = vmatpush3.bf16.msra.mxu1 %v472_v26 }
  0x44   :  { %268 = vmatprep.subr.bf16.mxu0 %v473_v27  ;;  %426 = vmatprep.subr.bf16.mxu1 %v581_v0  ;;  %v64_v40 = vadd.f32 %v63_v39, %v62_v38 }
  0x46   :  { %v65_v41 = vrot.slane %v64_v40, 4 }
  0x47   :  { %269 = vmatpush1.bf16.msra.mxu0 %v475_v30  ;;  %427 = vmatpush3.bf16.msra.mxu1 %v476_v31 }
  0x48   :  { %v66_v42 = vadd.f32 %v65_v41, %v64_v40 }
  0x4a   :  { %v67_v43 = vrot.slane %v66_v42, 2 }
  0x4c   :  { %v68_v44 = vadd.f32 %v67_v43, %v66_v42 }
  0x4e   :  { %v69_v45 = vrot.slane %v68_v44, 1 }
  0x50   :  { %v70_v46 = vadd.f32 %v69_v45, %v68_v44 }
  0x52   :  { %v71_v47 = vmul.f32 0.0625, %v70_v46 }
  0x54   :  { %v72_v48 = vadd.f32 1e-05, %v71_v47 }
  0x56   :  { %477 = vrsqrt.f32 %v72_v48 }
  0x60   :  { %v478_v53 = vpop.eup %477 }
  0x61   :  { %v75_v54 = vmul.f32 %v478_v53, %v74_v51 }
  0x63   :  { %v79_v55 = vrot.slane %v75_v54, %v78_v52 }
  0x65   :  { %v80_v57 = vmul.f32 %v79_v55, %v60_v36  ;;  %v81_v58 = vmul.f32 %v79_v55, %v61_v37 }
  0x67   :  { %v89_v59 = vadd.f32 %v378_v56, %v80_v57  ;;  %v90_v60 = vadd.f32 %v378_v56, %v81_v58 }
  0x69   :  { %v93_v61 = vpack.c.bf16 %v90_v60, %v89_v59  ;;  %91 = vst [vmem:[#allocation7] sm:$0xff] %v89_v59  ;;  %92 = vst [vmem:[#allocation7 + $0x8] sm:$0xff] %v90_v60 }
  0x6b   :  { %287 = vmatmul.mubr.bf16.vlgmr.msra.gmra.mrb[0].mxu0 %v93_v61  ;;  %429 = vmatmul.mubr.bf16.vlgmr.msra.gmra.mrb[0].mxu1 %v93_v61 }
  0x6c   :  { %534 = shalt.err (!%p531_p6)
}
  0x6d   :  { %s535_s26 = scalar_lea.hbm %s691_s4, 256 }
  0x6e   :  { %p536_p7 = scmp.ne.s32.totalorder %s691_s4, %s535_s26  ;;  %p539_p8 = scmp.lt.u32.totalorder %s535_s26, %s691_s4 }
  0x70   :  { %p541_p9 = pnand %p539_p8, %p536_p7 }
  0x72   :  { %544 = shalt.err (!%p541_p9)
}
  0x73   :  { %355 = dma.vmem_to_hbm [thread:$0]  %s350_s24, 256, %s691_s4, [#allocation4], %s576_s28, %s576_s28, %s577_s29  }
  0x74   :  { %s585_s10 = smov [#allocation8]  }
  0x75   :  { %s361_s11 = sshll.u32 %s585_s10, 4  ;;  %s362_s11 = int_to_ptr.vmem [resolvable:$true] %s361_s11 }
  0x76   :  { %s545_s12 = scalar_lea.vmem %s362_s11, 768  ;;  %p550_p11 = scmp.lt.s32.totalorder %s362_s11, %s362_s11 }
  0x77   :  { %p546_p10 = scmp.ne.s32.totalorder %s362_s11, %s545_s12  ;;  %p551_p12 = scmp.lt.s32.totalorder %s545_s12, %s545_s12 }
  0x79   :  { %p552_p13 = por %p551_p12, %p550_p11 }
  0x7b   :  { %p553_p0 = pnand %p552_p13, %p546_p10 }
 0x13e   :  { %v288_v62 = vpop.f32.mrb[0].mxu0  ;;  %v331_v63 = vpop.f32.mrb[0].mxu1 }
 0x13f   :  { %338 = vst [vmem:[#allocation8] sm:$0xff] %v288_v62  ;;  %340 = vst [vmem:[#allocation8 + $0x10] sm:$0xff] %v331_v63  ;;  %v290_v0 = vpop.f32.mrb[1].mxu0  ;;  %v430_v1 = vpop.f32.mrb[1].mxu1 }
 0x140   :  { %339 = vst [vmem:[#allocation8 + $0x8] sm:$0xff] %v290_v0  ;;  %v292_v2 = vpop.f32.mrb[2].mxu0  ;;  %v334_v3 = vpop.f32.mrb[2].mxu1 }
 0x141   :  { %341 = vst [vmem:[#allocation8 + $0x18] sm:$0xff] %v292_v2  ;;  %343 = vst [vmem:[#allocation8 + $0x28] sm:$0xff] %v334_v3  ;;  %v294_v4 = vpop.f32.mrb[3].mxu0  ;;  %v431_v5 = vpop.f32.mrb[3].mxu1 }
 0x142   :  { %342 = vst [vmem:[#allocation8 + $0x20] sm:$0xff] %v294_v4 }
 0x143   :  { %556 = shalt.err (!%p553_p0)
}
 0x144   :  { %s557_s29 = scalar_lea.hbm %s692_s5, 768 }
 0x145   :  { %p558_p1 = scmp.ne.s32.totalorder %s692_s5, %s557_s29  ;;  %p561_p2 = scmp.lt.u32.totalorder %s557_s29, %s692_s5 }
 0x147   :  { %p563_p3 = pnand %p561_p2, %p558_p1 }
 0x149   :  { %566 = shalt.err (!%p563_p3)
}
 0x14a   :  { %s586_s0 = smov 384   ;;  %s587_s17 = smov 24  }
 0x14b   :  { %367 = dma.vmem_to_hbm [thread:$0]  %s362_s11, 768, %s692_s5, [#allocation9], %s586_s0, %s586_s0, %s587_s17  }
 0x14c   :  { %571 = dma.done.wait [#allocation4], 256  }
 0x14d   :  { %572 = vsyncadd [#allocation4], 4294967040 }
 0x14e   :  { %573 = dma.done.wait [#allocation9], 768  }
 0x14f   :  { %574 = vsyncadd [#allocation9], 4294966528 }
 0x150   :  { %374 = vsyncpa [#allocation3], 1 }
 0x151   :  { %375 = vsyncpa [#allocation6], 1 }
 0x152   :  { %376 = vsyncpa [#allocation4], 1 }
 0x153   :  { %377 = vsyncpa [#allocation9], 1 }

</bundles_post_ra>
